<compile_context>
chip_gen: v5e
topology: v5e:2x2
jax: 0.10.0
libtpu: 0.0.40
codegen_flags: <defaults>
</compile_context>

<pallas_src>
import math
from functools import partial

import numpy as np
import jax
import jax.numpy as jnp
from jax.experimental import pallas as pl
from jax.experimental.pallas import tpu as pltpu


# ----------------------------------------------------------------------------
# Kernel: pure elementwise add of the (batch-amortized) scaled PE tile.
# ----------------------------------------------------------------------------
def _pe_add_kernel(p_ref, pe_ref, x_ref, o_ref):
    """p_ref: (1,) SMEM scalar, pe_ref: (TR, L), x_ref/o_ref: (Bt, TR, L)."""
    pe = p_ref[0] * pe_ref[...]                       # f32, shared across batch
    o_ref[...] = (x_ref[...] + pe[None]).astype(o_ref.dtype)


# ----------------------------------------------------------------------------
# Trace-time PE table in NCHW-flat order (fuses the einops rearranges).
# ----------------------------------------------------------------------------
def _build_pe_table(c, H, W, ps):
    n1, n2 = H // ps, W // ps
    N = n1 * n2
    E = c * ps * ps
    position = np.arange(N, dtype=np.float32)[:, None]
    div_term = np.exp(np.arange(0, E, 2, dtype=np.float32)
                      * np.float32(-math.log(10000.0) / float(E)))
    pe = np.zeros((N, E), dtype=np.float32)
    pe[:, 0::2] = np.sin(position * div_term)
    pe[:, 1::2] = np.cos(position * div_term[: E // 2])
    # Inverse of 'b c (n1 s1) (n2 s2) -> b (n1 n2) (c s1 s2)':
    # pe_nchw[c, n1*ps+s1, n2*ps+s2] = pe[n1*n2_idx.., c*ps*ps + s1*ps + s2]
    pe_nchw = pe.reshape(n1, n2, c, ps, ps).transpose(2, 0, 3, 1, 4)
    return pe_nchw.reshape(c * H * W)                 # NCHW-flat, f32


# ----------------------------------------------------------------------------
# Tiling heuristics.
# ----------------------------------------------------------------------------
def _choose_lanes(M):
    """Lane-dense last dim: 128 whenever possible (unmasked full-lane stores)."""
    if M % 128 == 0:
        return 128
    # TODO(synk): non-128-divisible c*H*W falls back to a masked-lane layout;
    # pad-to-128 with a masked tail would be faster for such shapes.
    for d in range(min(M, 2048), 0, -1):
        if M % d == 0:
            return d
    return M


def _choose_tiles(b, R, L, itemsize, target_block_bytes=2 << 20):
    """Pick (Bt, TR) with TR a multiple of 8 (or == R) and block <= ~2 MiB."""
    row_bytes = L * itemsize
    legal_tr = [d for d in range(R, 0, -1)
                if R % d == 0 and (d % 8 == 0 or d == R)]
    TR = legal_tr[-1]                                  # smallest legal fallback
    for d in legal_tr:
        if d * row_bytes <= target_block_bytes:
            TR = d
            break
    Bt = 1
    for d in range(b, 0, -1):
        if b % d == 0 and d * TR * row_bytes <= target_block_bytes:
            Bt = d
            break
    # v7x has 2 TensorCores: guarantee >=2 grid steps when the shape allows.
    if (R // TR) * (b // Bt) < 2:
        if Bt > 1:
            Bt = next(d for d in range(Bt // 2, 0, -1) if b % d == 0)
        elif TR % 16 == 0:
            TR //= 2
    return Bt, TR


# ----------------------------------------------------------------------------
# Wrapper.
# ----------------------------------------------------------------------------
@partial(jax.jit, static_argnames=("patch_size",))
def patch_embedding_forward(noisy, p, patch_size):
    """noisy: (b, c, H, W) NCHW; p: (1,) learnable scalar parameter."""
    b, c, H, W = noisy.shape
    ps = patch_size
    assert H % ps == 0 and W % ps == 0

    M = c * H * W                                      # elements per image
    L = _choose_lanes(M)
    R = M // L
    Bt, TR = _choose_tiles(b, R, L, noisy.dtype.itemsize)

    # Trace-time constant: zero per-call XLA compute, one small HBM stream.
    pe_flat = jnp.asarray(_build_pe_table(c, H, W, ps).reshape(R, L))

    # Pure flatten — bitcast under jit, no data movement.
    x = noisy.reshape(b, R, L)

    block_bytes = Bt * TR * L * noisy.dtype.itemsize
    pe_block_bytes = TR * L * 4
    needed = 2 * (2 * block_bytes + pe_block_bytes) + (1 << 20)
    vmem_limit = int(min(max(32 << 20, needed), 128 << 20))

    # Grid: row chunks outer, batch tiles inner -> the PE block index only
    # changes with the outer axis, so its copy is elided across batch tiles.
    grid = (R // TR, b // Bt)

    out = pl.pallas_call(
        _pe_add_kernel,
        out_shape=jax.ShapeDtypeStruct((b, R, L), noisy.dtype),
        grid=grid,
        in_specs=[
            pl.BlockSpec(memory_space=pltpu.MemorySpace.SMEM),        # p (1,)
            pl.BlockSpec((TR, L), lambda j, bi: (j, 0)),              # PE tile
            pl.BlockSpec((Bt, TR, L), lambda j, bi: (bi, j, 0)),      # x tile
        ],
        out_specs=pl.BlockSpec((Bt, TR, L), lambda j, bi: (bi, j, 0)),
        compiler_params=pltpu.CompilerParams(
            dimension_semantics=("parallel", "parallel"),
            vmem_limit_bytes=vmem_limit),
    )(p, pe_flat, x)

    # Pure unflatten — no data movement.
    return out.reshape(b, c, H, W)


# ----------------------------------------------------------------------------
# Pure-JAX reference mirroring the PyTorch forward.
# ----------------------------------------------------------------------------
def _reference_forward(noisy, p, patch_size):
    b, c, H, W = noisy.shape
    ps = patch_size
    n1, n2 = H // ps, W // ps
    N = n1 * n2
    E = c * ps * ps
    position = jnp.arange(N, dtype=jnp.float32)[:, None]
    div_term = jnp.exp(jnp.arange(0, E, 2, dtype=jnp.float32)
                       * (-math.log(10000.0) / E))
    pe = jnp.zeros((N, E), jnp.float32)
    pe = pe.at[:, 0::2].set(jnp.sin(position * div_term))
    pe = pe.at[:, 1::2].set(jnp.cos(position * div_term[: E // 2]))
    pe = pe[None] * p                                  # (1, N, E)
    pe = jnp.broadcast_to(pe, (b, N, E))
    x = noisy.reshape(b, c, n1, ps, n2, ps)
    x = jnp.transpose(x, (0, 2, 4, 1, 3, 5)).reshape(b, N, E)
    y = x + pe
    y = y.reshape(b, n1, n2, c, ps, ps)
    y = jnp.transpose(y, (0, 3, 1, 4, 2, 5)).reshape(b, c, H, W)
    return y


if __name__ == "__main__":
    # Shapes consistent with the module: img_size=16, patch_size=4,
    # inner_channel=4 -> input (b=2, c=4, 16, 16); N=16 patches, E=64.
    img_size = 16
    patch_size = 4
    inner_channel = 4
    batch = 2

    key = jax.random.PRNGKey(0)
    noisy = jax.random.normal(
        key, (batch, inner_channel, img_size, img_size), dtype=jnp.float32)
    p = jnp.array([1.0], dtype=jnp.float32)   # nn.Parameter(torch.tensor([1.0]))

    out = patch_embedding_forward(noisy, p, patch_size=patch_size)
    out = jax.block_until_ready(out)

    ref = _reference_forward(noisy, p, patch_size)
    assert out.shape == noisy.shape and out.dtype == noisy.dtype
    assert jnp.allclose(out, ref, atol=1e-5, rtol=1e-5)

    # Non-trivial learnable scale (same compiled executable).
    p2 = jnp.array([0.5], dtype=jnp.float32)
    out2 = jax.block_until_ready(
        patch_embedding_forward(noisy, p2, patch_size=patch_size))
    assert jnp.allclose(out2, _reference_forward(noisy, p2, patch_size),
                        atol=1e-5, rtol=1e-5)

    print("KERNEL_OK")
</pallas_src>

<mosaic_0001>
module attributes {stable_mosaic.version = 11 : i64} {
  func.func @_pe_add_kernel(%arg0: i32, %arg1: i32, %arg2: memref<1xf32, #tpu.memory_space<smem>>, %arg3: memref<8x128xf32, #tpu.memory_space<vmem>>, %arg4: memref<1x8x128xf32, #tpu.memory_space<vmem>>, %arg5: memref<1x8x128xf32, #tpu.memory_space<vmem>>) attributes {dimension_semantics = [#tpu.dimension_semantics<parallel>, #tpu.dimension_semantics<parallel>], iteration_bounds = array<i64: 1, 2>, scalar_prefetch = 0 : i64, scratch_operands = 0 : i64, tpu.core_type = #tpu.core_type<tc>, window_params = [{transform_indices = @transform_0, window_bounds = array<i64: 1>}, {transform_indices = @transform_1, window_bounds = array<i64: 8, 128>}, {transform_indices = @transform_2, window_bounds = array<i64: 1, 8, 128>}, {transform_indices = @transform_3, window_bounds = array<i64: 1, 8, 128>}]} {
    %c0 = arith.constant 0 : index
    %0 = memref.load %arg2[%c0] : memref<1xf32, #tpu.memory_space<smem>>
    %c0_0 = arith.constant 0 : index
    %c0_1 = arith.constant 0 : index
    %1 = vector.load %arg3[%c0_0, %c0_1] : memref<8x128xf32, #tpu.memory_space<vmem>>, vector<8x128xf32>
    %2 = vector.broadcast %0 : f32 to vector<8x128xf32>
    %3 = arith.mulf %2, %1 : vector<8x128xf32>
    %c0_2 = arith.constant 0 : index
    %c0_3 = arith.constant 0 : index
    %c0_4 = arith.constant 0 : index
    %4 = vector.load %arg4[%c0_2, %c0_3, %c0_4] : memref<1x8x128xf32, #tpu.memory_space<vmem>>, vector<1x8x128xf32>
    %5 = vector.shape_cast %3 : vector<8x128xf32> to vector<1x8x128xf32>
    %6 = arith.addf %4, %5 : vector<1x8x128xf32>
    %c0_5 = arith.constant 0 : index
    %c0_6 = arith.constant 0 : index
    %c0_7 = arith.constant 0 : index
    %7 = vector.load %arg5[%c0_5, %c0_6, %c0_7] : memref<1x8x128xf32, #tpu.memory_space<vmem>>, vector<1x8x128xf32>
    tpu.vector_store %arg5[%c0_5, %c0_6, %c0_7], %6 {strides = array<i32>} : memref<1x8x128xf32, #tpu.memory_space<vmem>>, vector<1x8x128xf32>,
    return
  }
  func.func @transform_0(%arg0: i32, %arg1: i32) -> i32 {
    %c0_i32 = arith.constant 0 : i32
    %c0_i32_0 = arith.constant 0 : i32
    return %c0_i32 : i32
  }
  func.func @transform_1(%arg0: i32, %arg1: i32) -> (i32, i32) {
    %c0_i32 = arith.constant 0 : i32
    %c0_i32_0 = arith.constant 0 : i32
    return %arg0, %c0_i32 : i32, i32
  }
  func.func @transform_2(%arg0: i32, %arg1: i32) -> (i32, i32, i32) {
    %c0_i32 = arith.constant 0 : i32
    %c0_i32_0 = arith.constant 0 : i32
    return %arg1, %arg0, %c0_i32 : i32, i32, i32
  }
  func.func @transform_3(%arg0: i32, %arg1: i32) -> (i32, i32, i32) {
    %c0_i32 = arith.constant 0 : i32
    %c0_i32_0 = arith.constant 0 : i32
    return %arg1, %arg0, %c0_i32 : i32, i32, i32
  }
}

</mosaic_0001>

<bundles_post_ra>
// kernel: patch_embedding_forward.1
= control target key start
LH: loop header
LB: loop body
LE: loop exit
PB: predicated region body
PF: predicated region fallthrough
CT: control target
= control target key end

     0   :  { %s393_s14 = smov 0   ;;  %s395_s15 = smov 0   ;;  %s417_s0 = inlined_call_operand.<no memory space> [shape: f32[1], index: 0, kind: input, shape index: {}]   ;;  %s418_s1 = inlined_call_operand.vmem [shape: f32[8,128], index: 1, kind: input, shape index: {}]   ;;  %s419_s2 = inlined_call_operand.vmem [shape: f32[2,8,128], index: 2, kind: input, shape index: {}]   ;;  %s420_s3 = inlined_call_operand.vmem [shape: f32[2,8,128], index: 3, kind: output, shape index: {}]  }
   0x1   :  { %8 = sst [smem:[#allocation2]] %s417_s0  ;;  %s397_s16 = smov 0  }
   0x2 LB: > { %s23_s17 = sadd.s32 1, %s364_s15  ;;  %p317_p0 = scmp.ge.s32.totalorder %s368_s16, 1  ;;  %s368_s16 = sphi %s397_s16, %s14_s16   ;;  %s364_s15 = sphi %s395_s15, %s422_s15   ;;  %s360_s14 = sphi %s393_s14, %s421_s14  }
   0x3   : > { %p24_p1 = scmp.ge.s32.totalorder %s23_s17, 2  ;;  %p165_p2 = scmp.lt.s32.totalorder %s368_s16, 3 }
   0x5   : > { %s424_s17 = smov (%p24_p1, %s23_s17), 0  ;;  %p166_p3 = pnand %p317_p0, %p165_p2 }
   0x6   : > { %p201_p4 = scmp.lt.s32.totalorder (!%p166_p3), %s360_s14, 1  ;;  %s215_s0 = sld [smem:[#allocation2]] (!%p166_p3) }
   0x7   : > { %169 = sbr.rel (%p166_p3) target bundleno = 19 (0x13), region = 32 }
   0xc   : > { %s426_s14 = smov (!%p201_p4, %s360_s14), 1  ;;  %v216_v0 = vld [vmem:[%s418_s1] sm:$0xff]  ;;  %v217_v1 = vstv %s215_s0 }
   0xd   : > { %s318_s18 = sshll.u32 %s426_s14, 3  ;;  %v218_v3 = vmul.f32 %v217_v1, %v216_v0 }
   0xe   : > { %s207_s23 = scalar_lea.vmem %s419_s2, %s318_s18  ;;  %s214_s26 = scalar_lea.vmem %s420_s3, %s318_s18 }
   0xf   : > { %v219_v2 = vld [vmem:[%s207_s23] sm:$0xff] }
  0x10   : > { %v220_v4 = vadd.f32 %v219_v2, %v218_v3 }
  0x12   : > { %221 = vst [vmem:[%s214_s26] sm:$0xff] %v220_v4 }
  0x13 PF: > { %s14_s16 = sadd.s32 1, %s368_s16   ;;  %s421_s14 = smov %s364_s15 }
  0x14   : > { %p11_p5 = scmp.ge.s32.totalorder %s14_s16, 4   ;;  %s422_s15 = smov %s424_s17 }
  0x16   :  { %13 = sbr.rel (!%p11_p5) target bundleno = 2 (0x2), region = 65 }

</bundles_post_ra>
